<compile_context>
chip_gen: v6e
topology: v6e:2x2x1
jax: 0.10.0
libtpu: 0.0.40
codegen_flags: <defaults>
</compile_context>

<pallas_src>
import jax
import jax.numpy as jnp
from jax.experimental import pallas as pl
from jax.experimental.pallas import tpu as pltpu


# -----------------------------------------------------------------------------
# Pallas kernel: element-wise pass-through of one (row_tile, 1024) block.
# -----------------------------------------------------------------------------
def _identity_kernel(x_ref, o_ref):
    o_ref[...] = x_ref[...]


_LANE_TILE = 1024                       # lane-dense: unmasked full-width stores
_TARGET_BLOCK_BYTES = 4 * 1024 * 1024   # ~4 MiB per block, all generations
_VMEM_LIMIT_BYTES = 48 * 1024 * 1024    # in+out double-buffered (16 MiB) << 48


def _sublane_multiple(itemsize: int) -> int:
    # f32 -> 8, bf16 -> 16, int8 -> 32 (packed sublane tiling).
    return max(8, 8 * (4 // max(1, itemsize)))


def _pick_row_tile(rows: int, itemsize: int) -> int:
    mult = _sublane_multiple(itemsize)
    # Target ~4 MiB blocks: amortizes the ~0.35 us per-grid-step overhead on
    # v6e/v7x while keeping 4 buffers (in+out, double-buffered) at 16 MiB,
    # under both the 48 MiB limit requested below and v7x's 64 MiB VMEM.
    target = max(mult, (_TARGET_BLOCK_BYTES // (_LANE_TILE * itemsize)) // mult * mult)
    if rows < 2 * mult:
        # Tiny arrays: one full-extent row block is always a legal block shape.
        return rows
    # Ensure at least 2 row blocks so both v7x TensorCores get work.
    half = -(-rows // 2)                 # cdiv(rows, 2)
    half = -(-half // mult) * mult       # round up to sublane multiple
    return min(target, half)


def pallas_identity(x: jax.Array) -> jax.Array:
    """Bit-exact pass-through of `x` via a lane-dense Pallas TPU copy kernel.

    The kernel does zero compute, so any path that would require padding or a
    trailing slice (extra HBM traffic) simply returns `x` unchanged instead.
    """
    if x.size == 0:
        return x

    total = x.size
    if total % _LANE_TILE != 0:
        # Unaligned tail would need pad + slice (~3x the kernel's own HBM
        # traffic).  For a pure identity, returning x is exact and free.
        return x

    rows = total // _LANE_TILE
    slab = x.reshape(rows, _LANE_TILE)   # contiguous reshape: no data movement
    row_tile = _pick_row_tile(rows, slab.dtype.itemsize)
    grid = (pl.cdiv(rows, row_tile),)    # ragged last block is masked by Pallas

    out = pl.pallas_call(
        _identity_kernel,
        out_shape=jax.ShapeDtypeStruct((rows, _LANE_TILE), slab.dtype),
        grid=grid,
        in_specs=[pl.BlockSpec((row_tile, _LANE_TILE), lambda i: (i, 0))],
        out_specs=pl.BlockSpec((row_tile, _LANE_TILE), lambda i: (i, 0)),
        # Unpadded path only: alias output onto the input buffer so no second
        # HBM array is materialized when the caller donates the buffer.
        input_output_aliases={0: 0},
        compiler_params=pltpu.CompilerParams(
            dimension_semantics=("parallel",),
            vmem_limit_bytes=_VMEM_LIMIT_BYTES,
        ),
    )(slab)

    return out.reshape(x.shape)


# -----------------------------------------------------------------------------
# BaseModule: JAX-side equivalent of the PyTorch dispatch scaffolding.
# -----------------------------------------------------------------------------
class BaseModule:
    """JAX/Pallas port of mai.model.base_module.BaseModule.

    Supports modes 'train' / 'eval' / 'export'.  forward() dispatches to
    forward_train / forward_eval / forward_export.  Mode changes propagate to
    child BaseModules.  freeze() marks all parameters non-trainable (emulated
    with stop_gradient, since JAX has no requires_grad flag).
    """

    def __init__(self):
        self.mode = "train"
        self._training = True
        self._frozen = False
        self._parameters = {}   # name -> jnp array
        self._modules = {}      # name -> child module

    # --- mode handling (mirrors the PyTorch class exactly) -------------------
    def set_train(self):
        self.set_mode("train")

    def set_eval(self):
        self.set_mode("eval")

    def set_export(self):
        self.set_mode("export")

    def set_mode(self, mode):
        assert mode in ["train", "eval", "export"]
        if mode in ["train"]:
            self._train(True)
        if mode in ["eval", "export"]:
            self._train(False)
        self.mode = mode
        for m in self._modules.values():
            if isinstance(m, BaseModule):
                m.set_mode(mode)

    def _train(self, flag=True):
        self._training = flag
        for m in self._modules.values():
            if isinstance(m, BaseModule):
                m._train(flag)

    # --- freezing -------------------------------------------------------------
    def freeze(self):
        self.do_freeze(self)

    def do_freeze(self, module):
        # TODO(synk): JAX has no per-tensor requires_grad; emulate by flagging
        # the module and applying stop_gradient to params in get_param().
        module._frozen = True
        for sub in module._modules.values():
            if sub is not None:
                self.do_freeze(sub)

    def get_param(self, name):
        p = self._parameters[name]
        return jax.lax.stop_gradient(p) if self._frozen else p

    # --- forward dispatch -----------------------------------------------------
    def __call__(self, *args, **kwargs):
        return self.forward(*args, **kwargs)

    def forward(self, *args, **kwargs):
        if self.mode == "train":
            return self.forward_train(*args, **kwargs)
        elif self.mode == "eval":
            return self.forward_eval(*args, **kwargs)
        elif self.mode == "export":
            return self.forward_export(*args, **kwargs)
        else:
            raise NotImplementedError

    def forward_train(self, *args, **kwargs):
        raise NotImplementedError

    def forward_eval(self, *args, **kwargs):
        # @torch.no_grad() equivalent: block gradients through the inputs.
        args = jax.tree_util.tree_map(jax.lax.stop_gradient, args)
        kwargs = jax.tree_util.tree_map(jax.lax.stop_gradient, kwargs)
        return self.forward_train(*args, **kwargs)

    def forward_export(self, *args, **kwargs):
        args = jax.tree_util.tree_map(jax.lax.stop_gradient, args)
        kwargs = jax.tree_util.tree_map(jax.lax.stop_gradient, kwargs)
        return self.forward_train(*args, **kwargs)


# -----------------------------------------------------------------------------
# Minimal concrete subclass exercising the dispatch with the Pallas kernel.
# (BaseModule itself has no parameters, so there is nothing to initialize.)
# -----------------------------------------------------------------------------
class PallasIdentityModule(BaseModule):
    def forward_train(self, x):
        # x: NCHW [B, C, H, W]; the wrapper re-lays it out as a lane-dense slab.
        return pallas_identity(x)


if __name__ == "__main__":
    key = jax.random.PRNGKey(0)
    x = jax.random.normal(key, (2, 4, 16, 16), dtype=jnp.float32)  # NCHW

    mod = PallasIdentityModule()

    # train mode (runs the Pallas copy kernel: 2048 elems -> (2, 1024) slab)
    y_train = mod(x)
    # eval mode
    mod.set_eval()
    y_eval = mod(x)
    # export mode
    mod.set_export()
    y_export = mod(x)
    # freeze (no params on the base class; just exercises the path)
    mod.freeze()
    mod.set_train()

    # Ragged row count: 3*8*32*32 = 24576 elems -> 24 rows of 1024.
    # Exercises the cdiv grid with a masked partial last block and a
    # 2-block parallel grid (both v7x TensorCores active).
    k1, k2 = jax.random.split(key)
    x_ragged = jax.random.normal(k1, (3, 8, 32, 32), dtype=jnp.float32)
    y_ragged = mod(x_ragged)

    # Unaligned total (2*3*7*7 = 294): identity short-circuit path (no kernel,
    # no padding, zero extra HBM traffic).
    x_odd = jax.random.normal(k2, (2, 3, 7, 7), dtype=jnp.float32)
    y_odd = mod(x_odd)

    jax.block_until_ready((y_train, y_eval, y_export, y_ragged, y_odd))

    assert y_train.shape == x.shape and y_train.dtype == x.dtype
    assert bool(jnp.all(y_train == x))
    assert bool(jnp.all(y_eval == x))
    assert bool(jnp.all(y_export == x))
    assert y_ragged.shape == x_ragged.shape and bool(jnp.all(y_ragged == x_ragged))
    assert y_odd.shape == x_odd.shape and bool(jnp.all(y_odd == x_odd))

    print("KERNEL_OK")
</pallas_src>

<mosaic_0001>
module attributes {stable_mosaic.version = 11 : i64} {
  func.func @_identity_kernel(%arg0: i32, %arg1: memref<2x1024xf32, #tpu.memory_space<vmem>>, %arg2: memref<2x1024xf32, #tpu.memory_space<vmem>>) attributes {dimension_semantics = [#tpu.dimension_semantics<parallel>], iteration_bounds = array<i64: 1>, scalar_prefetch = 0 : i64, scratch_operands = 0 : i64, tpu.core_type = #tpu.core_type<tc>, window_params = [{transform_indices = @transform_0, window_bounds = array<i64: 2, 1024>}, {transform_indices = @transform_1, window_bounds = array<i64: 2, 1024>}]} {
    %c0 = arith.constant 0 : index
    %c0_0 = arith.constant 0 : index
    %0 = vector.load %arg1[%c0, %c0_0] : memref<2x1024xf32, #tpu.memory_space<vmem>>, vector<2x1024xf32>
    %c0_1 = arith.constant 0 : index
    %c0_2 = arith.constant 0 : index
    %1 = vector.load %arg2[%c0_1, %c0_2] : memref<2x1024xf32, #tpu.memory_space<vmem>>, vector<2x1024xf32>
    tpu.vector_store %arg2[%c0_1, %c0_2], %0 {strides = array<i32>} : memref<2x1024xf32, #tpu.memory_space<vmem>>, vector<2x1024xf32>,
    return
  }
  func.func @transform_0(%arg0: i32) -> (i32, i32) {
    %c0_i32 = arith.constant 0 : i32
    %c0_i32_0 = arith.constant 0 : i32
    return %arg0, %c0_i32 : i32, i32
  }
  func.func @transform_1(%arg0: i32) -> (i32, i32) {
    %c0_i32 = arith.constant 0 : i32
    %c0_i32_0 = arith.constant 0 : i32
    return %arg0, %c0_i32 : i32, i32
  }
}

</mosaic_0001>

<bundles_post_ra>
// kernel: tpu_custom_call.1
= control target key start
LH: loop header
LB: loop body
LE: loop exit
PB: predicated region body
PF: predicated region fallthrough
CT: control target
= control target key end

     0   :  { %6 = vsyncpa [#allocation3], 0  ;;  %s104_s0 = inlined_call_operand.hbm [shape: f32[2,1024], index: 0, kind: input, shape index: {}, may-alias: {0,1}]   ;;  %s105_s1 = inlined_call_operand.hbm [shape: f32[2,1024], index: 1, kind: output, shape index: {}, may-alias: {0,1}]  }
   0x1   :  { %7 = vsyncpa [#allocation4], 0  ;;  %s86_s6 = smov [#allocation2]  }
   0x2   :  { %s14_s7 = sshll.u32 %s86_s6, 4  ;;  %s15_s7 = int_to_ptr.vmem [resolvable:$true] %s14_s7 }
   0x3   :  { %s50_s8 = scalar_lea.vmem %s15_s7, 256  ;;  %p55_p1 = scmp.lt.s32.totalorder %s15_s7, %s15_s7 }
   0x4   :  { %p51_p0 = scmp.ne.s32.totalorder %s15_s7, %s50_s8  ;;  %p56_p2 = scmp.lt.s32.totalorder %s50_s8, %s50_s8 }
   0x6   :  { %p57_p3 = por %p56_p2, %p55_p1 }
   0x8   :  { %p58_p4 = pnand %p57_p3, %p51_p0 }
   0xa   :  { %61 = shalt.err (!%p58_p4)
}
   0xb   :  { %17 = dma.hbm_to_vmem [thread:$0]  %s104_s0, 256, %s15_s7, [#allocation3]  }
   0xc   :  { %82 = dma.done.wait [#allocation3], 256  }
   0xd   :  { %83 = vsyncadd [#allocation3], 4294967040  ;;  %s87_s11 = smov [#allocation5]   ;;  %v21_v0 = vld [vmem:[#allocation2] sm:$0xff]  ;;  %v22_v1 = vld [vmem:[#allocation2 + $0x8] sm:$0xff] }
   0xe   :  { %s31_s12 = sshll.u32 %s87_s11, 4  ;;  %23 = vst [vmem:[#allocation5] sm:$0xff] %v21_v0  ;;  %24 = vst [vmem:[#allocation5 + $0x8] sm:$0xff] %v22_v1  ;;  %s32_s12 = int_to_ptr.vmem [resolvable:$true] %s31_s12 }
   0xf   :  { %s62_s13 = scalar_lea.vmem %s32_s12, 256  ;;  %p67_p6 = scmp.lt.s32.totalorder %s32_s12, %s32_s12 }
  0x10   :  { %p63_p5 = scmp.ne.s32.totalorder %s32_s12, %s62_s13  ;;  %p68_p7 = scmp.lt.s32.totalorder %s62_s13, %s62_s13 }
  0x12   :  { %p69_p8 = por %p68_p7, %p67_p6 }
  0x14   :  { %p70_p9 = pnand %p69_p8, %p63_p5 }
  0x16   :  { %73 = shalt.err (!%p70_p9)
}
  0x17   :  { %34 = dma.vmem_to_hbm [thread:$0]  %s32_s12, 256, %s105_s1, [#allocation4]  }
  0x18   :  { %84 = dma.done.wait [#allocation4], 256  }
  0x19   :  { %85 = vsyncadd [#allocation4], 4294967040 }
  0x1a   :  { %38 = vsyncpa [#allocation3], 1 }
  0x1b   :  { %39 = vsyncpa [#allocation4], 1 }

</bundles_post_ra>
